<compile_context>
chip_gen: v5e
topology: v5e:2x2
jax: 0.10.0
libtpu: 0.0.40
codegen_flags: <defaults>
</compile_context>

<pallas_src>
import functools

import jax
import jax.numpy as jnp
from jax import lax
from jax.experimental import pallas as pl
from jax.experimental.pallas import tpu as pltpu


def _bottleneck_kernel(x_ref, w_ref, b_ref, o_ref, *, offsets, lp):
    """One grid step: nb fused batch elements, full (packed) sequence.

    x_ref : (R, PC)            R = nb * LP packed rows, PC = pack * C lanes
    w_ref : (nblocks, PC, PC)  block-structured weights, one per row offset d
    b_ref : (1, PC)            packed bias (zero in the zero-padded channels)
    o_ref : (R, PC)            output, same packed layout as the input
    """
    R, PC = o_ref.shape
    nb = R // lp

    x2 = x_ref[...]

    row = None
    if any(d != 0 for d in offsets):
        row = lax.broadcasted_iota(jnp.int32, (R, PC), 0)
        if nb > 1:
            row = row % lp              # row index within each fused sequence

    acc = None
    for idx, d in enumerate(offsets):
        # Unshifted matmul over the whole fused tile (MXU, K = N = PC).
        z = jnp.dot(x2, w_ref[idx], preferred_element_type=jnp.float32)
        if d != 0:
            # out[r] += z[r + d]:  roll the *result* (XLU slot, no VMEM halo
            # copy) and zero the rows that wrapped across sequence / batch
            # boundaries -- exactly the conv's zero padding.
            z = pltpu.roll(z, shift=(-d) % R, axis=0)
            valid = (row < lp - d) if d > 0 else (row >= -d)
            z = jnp.where(valid, z, 0.0)
        acc = z if acc is None else acc + z

    acc = acc + b_ref[...]              # bias broadcast added once
    o_ref[...] = acc.astype(o_ref.dtype)


def convolutional_bottleneck(x, weight, bias, *, width):
    """x: (N, L, num_motifs); weight: (num_output_motifs, num_motifs, width);
    bias: (num_output_motifs,).  Returns (N, L, num_motifs)."""
    assert width % 2 == 1, "PyTorch module requires odd width"
    N, L, C = x.shape
    OC, IC, W = weight.shape
    assert IC == C and W == width and OC <= C
    pad = width // 2
    itemsize = jnp.dtype(x.dtype).itemsize

    # ---- lane packing: make the minor dim 128-dense when possible ---------
    pack = 128 // C if (C <= 128 and 128 % C == 0) else 1
    PC = pack * C

    # Pad L with zeros to a multiple of pack*sublane so packed rows are
    # native-tile aligned.  Trailing zero rows reproduce the conv's zero
    # padding for the last real positions and are sliced off afterwards.
    sub = {4: 8, 2: 16, 1: 32}.get(itemsize, 8)
    unit = pack * sub
    L_pad = ((L + unit - 1) // unit) * unit
    if L_pad != L:
        x = jnp.pad(x, ((0, 0), (0, L_pad - L), (0, 0)))
    LP = L_pad // pack                      # packed rows per sequence
    x_flat = x.reshape(N * LP, PC)          # contiguous reshape (free)

    # ---- fold the width taps into block-structured (PC, PC) weights -------
    # packed_out[r] = sum_d packed_in[r + d] @ W_d,
    # W_d[a*C + i, j*C + c] = conv_w[c, i, k]  with  k = d*pack + a - j + pad.
    w_t = jnp.transpose(weight, (2, 1, 0)).astype(x.dtype)      # (width, C, OC)
    zeros_cc = jnp.zeros((C, C), x.dtype)
    n_halo = -(-pad // pack)                # ceil(pad / pack)
    offsets = tuple(range(-n_halo, n_halo + 1))
    blocks = []
    for d in offsets:
        rows = []
        for a in range(pack):
            cols = []
            for j in range(pack):
                k = d * pack + a - j + pad
                if 0 <= k < width:
                    cols.append(jnp.pad(w_t[k], ((0, 0), (0, C - OC))))
                else:
                    cols.append(zeros_cc)
            rows.append(jnp.concatenate(cols, axis=1))           # (C, PC)
        blocks.append(jnp.concatenate(rows, axis=0))             # (PC, PC)
    w_blocks = jnp.stack(blocks, axis=0)                         # (nblk, PC, PC)

    # Bias for the real output channels, zero elsewhere (per lane group).
    b_pack = jnp.tile(jnp.pad(bias.astype(jnp.float32), (0, C - OC)), pack)
    b_pack = b_pack.reshape(1, PC)

    # ---- choose the batch block from a VMEM budget -------------------------
    # Per batch element / grid step: double-buffered in+out blocks plus ~6
    # f32-sized in-kernel temporaries (z, rolled, masked, acc, iota, ...).
    per_batch = LP * PC * (4 * itemsize + 6 * 4)
    budget = 24 << 20
    nb = max(1, min(N, budget // max(per_batch, 1)))
    if N >= 2:
        nb = max(1, min(nb, N // 2))        # keep >= 2 grid steps for megacore
    while N % nb:
        nb -= 1

    w_bytes = int(w_blocks.size) * jnp.dtype(w_blocks.dtype).itemsize
    vmem_est = nb * per_batch + w_bytes + (2 << 20)
    vmem_limit = int(min(max(vmem_est, 8 << 20), 48 << 20))

    kernel = functools.partial(_bottleneck_kernel, offsets=offsets, lp=LP)

    # TODO(synk): add an L-tile grid axis (with halo-aware masking) for
    # sequences too long for a full (nb*LP, PC) block to fit in VMEM.
    out = pl.pallas_call(
        kernel,
        out_shape=jax.ShapeDtypeStruct((N * LP, PC), x.dtype),
        grid_spec=pltpu.PrefetchScalarGridSpec(
            num_scalar_prefetch=0,
            grid=(N // nb,),
            in_specs=[
                pl.BlockSpec((nb * LP, PC), lambda n: (n, 0)),
                pl.BlockSpec((len(offsets), PC, PC), lambda n: (0, 0, 0)),
                pl.BlockSpec((1, PC), lambda n: (0, 0)),
            ],
            out_specs=pl.BlockSpec((nb * LP, PC), lambda n: (n, 0)),
        ),
        compiler_params=pltpu.CompilerParams(
            dimension_semantics=("parallel",),
            vmem_limit_bytes=vmem_limit),
    )(x_flat, w_blocks, b_pack)

    out = out.reshape(N, L_pad, C)
    if L_pad != L:
        out = out[:, :L, :]
    return out


def _reference(x, weight, bias, *, width):
    """Pure-JAX reference reproducing the PyTorch forward (f32, exact)."""
    N, L, C = x.shape
    OC = weight.shape[0]
    pad = width // 2
    xt = jnp.transpose(x, (0, 2, 1))                            # (N, C, L)
    y = lax.conv_general_dilated(
        xt, weight, window_strides=(1,), padding=[(pad, pad)],
        dimension_numbers=("NCH", "OIH", "NCH"),
        precision=lax.Precision.HIGHEST)
    y = y + bias.reshape(1, OC, 1)                              # (N, OC, L)
    y = jnp.concatenate([y, jnp.zeros((N, C - OC, L), y.dtype)], axis=1)
    return jnp.transpose(y, (0, 2, 1))                          # (N, L, C)


if __name__ == "__main__":
    base_key = jax.random.PRNGKey(0)

    def run_case(tag, N, L, C, OC, width, dtype, atol):
        kx, kw, kb = jax.random.split(jax.random.fold_in(base_key, tag), 3)
        x = jax.random.normal(kx, (N, L, C), dtype=jnp.float32)
        w = jax.random.normal(kw, (OC, C, width), dtype=jnp.float32) * 0.1
        b = jax.random.normal(kb, (OC,), dtype=jnp.float32) * 0.1

        x_d, w_d, b_d = x.astype(dtype), w.astype(dtype), b.astype(dtype)
        out = convolutional_bottleneck(x_d, w_d, b_d, width=width)
        out = jax.block_until_ready(out)
        assert out.shape == (N, L, C)

        ref = _reference(x_d.astype(jnp.float32), w_d.astype(jnp.float32),
                         b_d.astype(jnp.float32), width=width)
        err = float(jnp.max(jnp.abs(out.astype(jnp.float32) - ref)))
        assert err <= atol, (tag, err)

    # Main case: 128-lane packed path (C=32 -> pack=4), batch split over grid.
    run_case(0, N=4, L=128, C=32, OC=2, width=5, dtype=jnp.float32, atol=1e-4)
    # Non-multiple L (padding path) and a wider kernel (2-row halo).
    run_case(1, N=2, L=100, C=32, OC=2, width=11, dtype=jnp.float32, atol=1e-4)
    # bf16 inputs (f32 accumulation inside the kernel).
    run_case(2, N=2, L=96, C=32, OC=2, width=5, dtype=jnp.bfloat16, atol=6e-2)

    print("KERNEL_OK")
</pallas_src>

<mosaic_0001>
module attributes {stable_mosaic.version = 11 : i64} {
  func.func @_bottleneck_kernel(%arg0: i32, %arg1: memref<64x128xf32, #tpu.memory_space<vmem>>, %arg2: memref<3x128x128xf32, #tpu.memory_space<vmem>>, %arg3: memref<1x128xf32, #tpu.memory_space<vmem>>, %arg4: memref<64x128xf32, #tpu.memory_space<vmem>>) attributes {dimension_semantics = [#tpu.dimension_semantics<parallel>], iteration_bounds = array<i64: 2>, scalar_prefetch = 0 : i64, scratch_operands = 0 : i64, tpu.core_type = #tpu.core_type<tc>, window_params = [{transform_indices = @transform_0, window_bounds = array<i64: 64, 128>}, {pipeline_mode = #tpu.pipeline_mode<synchronous>, transform_indices = @transform_1, window_bounds = array<i64: 3, 128, 128>}, {pipeline_mode = #tpu.pipeline_mode<synchronous>, transform_indices = @transform_2, window_bounds = array<i64: 1, 128>}, {transform_indices = @transform_3, window_bounds = array<i64: 64, 128>}]} {
    %c0 = arith.constant 0 : index
    %c0_0 = arith.constant 0 : index
    %0 = vector.load %arg1[%c0, %c0_0] : memref<64x128xf32, #tpu.memory_space<vmem>>, vector<64x128xf32>
    %1 = tpu.iota {dimensions = array<i32: 0>} : vector<64x128xi32>
    %c32_i32 = arith.constant 32 : i32
    %c0_i32 = arith.constant 0 : i32
    %2 = arith.cmpi eq, %c32_i32, %c0_i32 : i32
    %c1_i32 = arith.constant 1 : i32
    %3 = arith.select %2, %c1_i32, %c32_i32 : i32
    %4 = vector.broadcast %3 : i32 to vector<64x128xi32>
    %5 = arith.remsi %1, %4 : vector<64x128xi32>
    %c0_i32_1 = arith.constant 0 : i32
    %6 = vector.broadcast %c0_i32_1 : i32 to vector<64x128xi32>
    %7 = arith.cmpi ne, %5, %6 : vector<64x128xi32>
    %c0_i32_2 = arith.constant 0 : i32
    %8 = vector.broadcast %c0_i32_2 : i32 to vector<64x128xi32>
    %9 = arith.cmpi slt, %5, %8 : vector<64x128xi32>
    %c0_i32_3 = arith.constant 0 : i32
    %10 = arith.cmpi slt, %3, %c0_i32_3 : i32
    %11 = vector.broadcast %10 : i1 to vector<64x128xi1>
    %12 = vector.broadcast %11 : vector<64x128xi1> to vector<64x128xi1>
    %13 = arith.xori %9, %12 : vector<64x128xi1>
    %14 = arith.andi %13, %7 : vector<64x128xi1>
    %15 = vector.broadcast %3 : i32 to vector<64x128xi32>
    %16 = arith.addi %5, %15 : vector<64x128xi32>
    %17 = arith.select %14, %16, %5 : vector<64x128xi1>, vector<64x128xi32>
    %c0_4 = arith.constant 0 : index
    %c0_5 = arith.constant 0 : index
    %c0_6 = arith.constant 0 : index
    %18 = vector.load %arg2[%c0_4, %c0_5, %c0_6] : memref<3x128x128xf32, #tpu.memory_space<vmem>>, vector<1x128x128xf32>
    %19 = vector.shape_cast %18 : vector<1x128x128xf32> to vector<128x128xf32>
    %cst = arith.constant dense<0.000000e+00> : vector<64x128xf32>
    %20 = tpu.matmul %0, %19, %cst {dimension_numbers = #tpu.dot_dimension_numbers<[1], [0], [0], [1], [0, 0, 1, 1], [], []>} : vector<64x128xf32>, vector<128x128xf32>, vector<64x128xf32> -> vector<64x128xf32>
    %c1_i32_7 = arith.constant 1 : i32
    %21 = tpu.dynamic_rotate %20 by %c1_i32_7 dim 0 : vector<64x128xf32>, i32 -> vector<64x128xf32>
    %c1_i32_8 = arith.constant 1 : i32
    %22 = vector.broadcast %c1_i32_8 : i32 to vector<64x128xi32>
    %23 = arith.cmpi sge, %17, %22 : vector<64x128xi32>
    %cst_9 = arith.constant 0.000000e+00 : f32
    %24 = vector.broadcast %cst_9 : f32 to vector<64x128xf32>
    %25 = arith.select %23, %21, %24 : vector<64x128xi1>, vector<64x128xf32>
    %c1 = arith.constant 1 : index
    %c0_10 = arith.constant 0 : index
    %c0_11 = arith.constant 0 : index
    %26 = vector.load %arg2[%c1, %c0_10, %c0_11] : memref<3x128x128xf32, #tpu.memory_space<vmem>>, vector<1x128x128xf32>
    %27 = vector.shape_cast %26 : vector<1x128x128xf32> to vector<128x128xf32>
    %cst_12 = arith.constant dense<0.000000e+00> : vector<64x128xf32>
    %28 = tpu.matmul %0, %27, %cst_12 {dimension_numbers = #tpu.dot_dimension_numbers<[1], [0], [0], [1], [0, 0, 1, 1], [], []>} : vector<64x128xf32>, vector<128x128xf32>, vector<64x128xf32> -> vector<64x128xf32>
    %29 = arith.addf %25, %28 : vector<64x128xf32>
    %c2 = arith.constant 2 : index
    %c0_13 = arith.constant 0 : index
    %c0_14 = arith.constant 0 : index
    %30 = vector.load %arg2[%c2, %c0_13, %c0_14] : memref<3x128x128xf32, #tpu.memory_space<vmem>>, vector<1x128x128xf32>
    %31 = vector.shape_cast %30 : vector<1x128x128xf32> to vector<128x128xf32>
    %cst_15 = arith.constant dense<0.000000e+00> : vector<64x128xf32>
    %32 = tpu.matmul %0, %31, %cst_15 {dimension_numbers = #tpu.dot_dimension_numbers<[1], [0], [0], [1], [0, 0, 1, 1], [], []>} : vector<64x128xf32>, vector<128x128xf32>, vector<64x128xf32> -> vector<64x128xf32>
    %c63_i32 = arith.constant 63 : i32
    %33 = tpu.dynamic_rotate %32 by %c63_i32 dim 0 : vector<64x128xf32>, i32 -> vector<64x128xf32>
    %c31_i32 = arith.constant 31 : i32
    %34 = vector.broadcast %c31_i32 : i32 to vector<64x128xi32>
    %35 = arith.cmpi slt, %17, %34 : vector<64x128xi32>
    %cst_16 = arith.constant 0.000000e+00 : f32
    %36 = vector.broadcast %cst_16 : f32 to vector<64x128xf32>
    %37 = arith.select %35, %33, %36 : vector<64x128xi1>, vector<64x128xf32>
    %38 = arith.addf %29, %37 : vector<64x128xf32>
    %c0_17 = arith.constant 0 : index
    %c0_18 = arith.constant 0 : index
    %39 = vector.load %arg3[%c0_17, %c0_18] : memref<1x128xf32, #tpu.memory_space<vmem>>, vector<1x128xf32>
    %40 = vector.broadcast %39 : vector<1x128xf32> to vector<64x128xf32>
    %41 = arith.addf %38, %40 : vector<64x128xf32>
    %c0_19 = arith.constant 0 : index
    %c0_20 = arith.constant 0 : index
    %42 = vector.load %arg4[%c0_19, %c0_20] : memref<64x128xf32, #tpu.memory_space<vmem>>, vector<64x128xf32>
    tpu.vector_store %arg4[%c0_19, %c0_20], %41 {strides = array<i32>} : memref<64x128xf32, #tpu.memory_space<vmem>>, vector<64x128xf32>,
    return
  }
  func.func @transform_0(%arg0: i32) -> (i32, i32) {
    %c0_i32 = arith.constant 0 : i32
    %c0_i32_0 = arith.constant 0 : i32
    return %arg0, %c0_i32 : i32, i32
  }
  func.func @transform_1(%arg0: i32) -> (i32, i32, i32) {
    %c0_i32 = arith.constant 0 : i32
    %c0_i32_0 = arith.constant 0 : i32
    %c0_i32_1 = arith.constant 0 : i32
    %c0_i32_2 = arith.constant 0 : i32
    return %c0_i32, %c0_i32_0, %c0_i32_1 : i32, i32, i32
  }
  func.func @transform_2(%arg0: i32) -> (i32, i32) {
    %c0_i32 = arith.constant 0 : i32
    %c0_i32_0 = arith.constant 0 : i32
    %c0_i32_1 = arith.constant 0 : i32
    return %c0_i32, %c0_i32_0 : i32, i32
  }
  func.func @transform_3(%arg0: i32) -> (i32, i32) {
    %c0_i32 = arith.constant 0 : i32
    %c0_i32_0 = arith.constant 0 : i32
    return %arg0, %c0_i32 : i32, i32
  }
}

</mosaic_0001>

<bundles_post_ra>
// kernel: tpu_custom_call.1
= control target key start
LH: loop header
LB: loop body
LE: loop exit
PB: predicated region body
PF: predicated region fallthrough
CT: control target
= control target key end

     0   :  { %8 = vsyncpa [#allocation3], 0  ;;  %s1253_s0 = inlined_call_operand.hbm [shape: f32[128,128], index: 0, kind: input, shape index: {}]   ;;  %s1254_s1 = inlined_call_operand.hbm [shape: f32[3,128,128], index: 1, kind: input, shape index: {}]   ;;  %s1255_s2 = inlined_call_operand.vmem [shape: f32[1,128], index: 2, kind: input, shape index: {}]   ;;  %s1256_s3 = inlined_call_operand.hbm [shape: f32[128,128], index: 3, kind: output, shape index: {}]  }
   0x1   :  { %10 = vsyncpa [#allocation3 + $0x1], 0 }
   0x2   :  { %11 = vsyncpa [#allocation6], 0 }
   0x3   :  { %12 = vsyncpa [#allocation4], 0 }
   0x4   :  { %14 = vsyncpa [#allocation4 + $0x1], 0  ;;  %s966_s12 = smov 0   ;;  %s968_s13 = smov 0  }
   0x5   :  { %s970_s14 = smov 0   ;;  %s972_s15 = smov 0  }
   0x6 LB: > { %s987_s16 = sadd.s32 4294967295, %s939_s15   ;;  %s697_s17 = sadd.s32 4294967294, %s939_s15   ;;  %s939_s15 = sphi %s972_s15, %s1266_s15   ;;  %s935_s14 = sphi %s970_s14, %s1265_s14   ;;  %s931_s13 = sphi %s968_s13, %s1264_s13   ;;  %s927_s12 = sphi %s966_s12, %s1263_s12  }
   0x7   : > { %p40_p0 = scmp.ne.s32.totalorder %s931_s13, %s927_s12  ;;  %p41_p1 = scmp.eq.s32.totalorder %s987_s16, 0 }
   0x8   : > { %p106_p2 = scmp.eq.s32.totalorder %s987_s16, 1  ;;  %p112_p3 = scmp.eq.s32.totalorder %s697_s17, 1 }
   0x9   : > { %p996_p4 = por %p41_p1, %p40_p0  ;;  %p698_p5 = scmp.ge.s32.totalorder %s939_s15, 1 }
   0xa   : > { %p1001_p6 = por %p112_p3, %p40_p0  ;;  %p119_p7 = scmp.lt.s32.totalorder %s939_s15, 3 }
   0xb   : > { %s130_s22 = sshll.u32 %s1254_s1, 4  ;;  %s941_s24 = smov [#allocation5]   ;;  %s131_s22 = int_to_ptr.hbm [resolvable:$true] %s130_s22 }
   0xc   : > { %p1009_p8 = pnand %p698_p5, %p119_p7  ;;  %s132_s25 = sshll.u32 %s941_s24, 4  ;;  %s133_s25 = int_to_ptr.vmem [resolvable:$true] %s132_s25 }
   0xd   : > { %s1019_s26 = sadd.s32 1, %s939_s15   ;;  %s942_s27 = smov 128  }
   0xe   : > { %p755_p9 = pneg %p1009_p8  ;;  %s943_s28 = smov 8  }
   0xf   : > { %s24_s29 = ssub.s32 %s939_s15, %s1019_s26  ;;  %s27_s30 = sadd.s32 1, %s935_s14 }
  0x10   : > { %p756_p10 = pnand %p755_p9, %p41_p1  ;;  %p25_p12 = scmp.eq.s32.totalorder %s24_s29, 0 }
  0x11   : > { %p34_p13 = scmp.ne.s32.totalorder %s935_s14, %s931_s13  ;;  %p35_p0 = scmp.eq.s32.totalorder %s939_s15, 0 }
  0x12   : > { %758 = dma.hbm_to_vmem [thread:$0]  (!%p756_p10), %s131_s22, 6144, %s133_s25, [#allocation6], %s942_s27, %s942_s27, %s943_s28  }
  0x13   : > { %s1031_s4 = scalar_select %p25_p12, %s935_s14, %s27_s30  }
  0x14   : > { %p1035_p3 = por %p106_p2, %p34_p13  ;;  %p768_p5 = scmp.lt.s32.totalorder %s939_s15, 2 }
  0x15   : > { %s149_s6 = sand.u32 1, %s935_s14   ;;  %s713_s7 = sshll.u32 %s939_s15, 6 }
  0x16   : > { %p36_p7 = por %p35_p0, %p34_p13  ;;  %s701_s8 = sshll.u32 %s149_s6, 6 }
  0x17   : > { %s158_s11 = scalar_lea.hbm %s1253_s0, %s713_s7  ;;  %s153_s20 = scalar_lea.vmem [#allocation2], %s701_s8 }
  0x18   : > { %s159_s17 = sshll.u32 %s158_s11, 4  ;;  %s161_s21 = sshll.u32 %s153_s20, 4  ;;  %s160_s17 = int_to_ptr.hbm [resolvable:$true] %s159_s17  ;;  %s162_s21 = int_to_ptr.vmem [resolvable:$true] %s161_s21 }
  0x19   : > { %p1045_p9 = pnand %p768_p5, %p36_p7  ;;  %s150_s24 = scalar_lea.sflag [#allocation3], %s149_s6 }
  0x1a   : > { %s839_s25 = sshra.s32 %s160_s17, 4  ;;  %s846_s8 = scalar_lea.hbm %s1253_s0, 128  ;;  %s840_s25 = int_to_ptr.hbm [resolvable:$true] %s839_s25 }
  0x1b   : > { %s841_s29 = scalar_lea.hbm %s840_s25, 64  ;;  %p843_p10 = pneg %p1045_p9 }
  0x1c   : > { %p842_p2 = scmp.ne.s32.totalorder %s840_s25, %s841_s29  ;;  %p847_p0 = scmp.lt.s32.totalorder %s840_s25, %s1253_s0 }
  0x1d   : > { %p848_p5 = scmp.lt.s32.totalorder %s846_s8, %s841_s29 }
  0x1e   : > { %p844_p12 = pnand %p843_p10, %p842_p2 }
  0x1f   : > { %p849_p7 = por %p848_p5, %p847_p0 }
  0x20   : > { %p845_p13 = pneg %p844_p12 }
  0x22   : > { %p850_p11 = pnand %p849_p7, %p845_p13 }
  0x24   : > { %853 = shalt.err (!%p850_p11)
}
  0x25   : > { %762 = dma.hbm_to_vmem [thread:$0]  (!%p1045_p9), %s160_s17, 1024, %s162_s21, %s150_s24, %s942_s27, %s942_s27, %s943_s28  }
  0x26   : > { %173 = sbr.rel (%p1009_p8) target bundleno = 279 (0x117), region = 32  ;;  %s1065_s6 = sand.u32 (!%p1009_p8), 1, %s931_s13  }
  0x27   : > { %s705_s11 = sshll.u32 (!%p1009_p8), %s1065_s6, 6  ;;  %s176_s20 = scalar_lea.sflag (!%p1009_p8), [#allocation3], %s1065_s6 }
  0x28   : > { %s1071_s25 = scalar_lea.vmem (!%p1009_p8), [#allocation2], %s705_s11 }
  0x2b   : > { %914 = dma.done.wait (%p996_p4), %s176_s20, 1024  }
  0x2c   : > { %916 = vsyncadd (%p996_p4), %s176_s20, 4294966272 }
  0x2d   : > { %918 = dma.done.wait (%p41_p1), [#allocation6], 6144  }
  0x2e   : > { %920 = vsyncadd (%p41_p1), [#allocation6], 4294961152  ;;  %v338_v0 = vld [vmem:[#allocation5 + $0x78] sm:$0xff]  ;;  %v337_v2 = vld [vmem:[#allocation5 + $0x70] sm:$0xff]  ;;  %v218_v58 = vlaneseq  ;;  %s1168_s27 = scalar_lea.vmem [#allocation7], %s705_s11  ;;  %s714_s28 = sshll.u32 %s987_s16, 6 }
  0x2f   : > { %v495_v1 = vld [vmem:[#allocation5 + $0x178] sm:$0xff]  ;;  %715 = vmatpush.msra.mxu3 %v338_v0  ;;  %v494_v3 = vld [vmem:[#allocation5 + $0x170] sm:$0xff]  ;;  %v336_v5 = vld [vmem:[#allocation5 + $0x68] sm:$0xff]  ;;  %339 = vmatpush.msra.mxu0 %v338_v0  ;;  %s610_s22 = scalar_lea.hbm %s1256_s3, %s714_s28  ;;  %s611_s16 = sshll.u32 %s1168_s27, 4  ;;  %s612_s16 = int_to_ptr.vmem [resolvable:$true] %s611_s16 }
  0x30   : > { %496 = vmatpush.msra.mxu2 %v495_v1  ;;  %v1081_v4 = vld [vmem:[#allocation5 + $0xf8] sm:$0xff]  ;;  %v493_v6 = vld [vmem:[#allocation5 + $0x168] sm:$0xff]  ;;  %v1084_v7 = vld [vmem:[#allocation5 + $0xf0] sm:$0xff]  ;;  %v1141_v61 = vshrl.u32 %v218_v58, 7  ;;  %s613_s24 = sshll.u32 %s610_s22, 4  ;;  %s599_s29 = scalar_lea.sflag [#allocation4], %s1065_s6  ;;  %s614_s24 = int_to_ptr.hbm [resolvable:$true] %s613_s24 }
  0x31   : > { %430 = vmatpush.msra.mxu1 %v1081_v4  ;;  %716 = vmatpush.msra.mxu3 %v337_v2  ;;  %v1086_v8 = vld [vmem:[#allocation5 + $0xe8] sm:$0xff]  ;;  %v335_v9 = vld [vmem:[#allocation5 + $0x60] sm:$0xff]  ;;  %v334_v12 = vld [vmem:[#allocation5 + $0x58] sm:$0xff]  ;;  %s883_s30 = sshra.s32 %s614_s24, 4  ;;  %s889_s10 = scalar_lea.hbm %s1256_s3, 128  ;;  %s884_s30 = int_to_ptr.hbm [resolvable:$true] %s883_s30 }
  0x32   : > { %497 = vmatpush.msra.mxu2 %v494_v3  ;;  %v492_v10 = vld [vmem:[#allocation5 + $0x160] sm:$0xff]  ;;  %340 = vmatpush.msra.mxu0 %v337_v2  ;;  %v491_v13 = vld [vmem:[#allocation5 + $0x158] sm:$0xff]  ;;  %v333_v15 = vld [vmem:[#allocation5 + $0x50] sm:$0xff]  ;;  %v231_v0 = vand.u32 31, %v1141_v61  ;;  %vm388_vm0 = vcmp.lt.s32.totalorder %v1141_v61, 1  ;;  %vm545_vm2 = vcmp.lt.s32.totalorder %v1141_v61, 7  ;;  %p890_p11 = scmp.lt.s32.totalorder %s884_s30, %s1256_s3 }
  0x33   : > { %431 = vmatpush.msra.mxu1 %v1084_v7  ;;  %717 = vmatpush.msra.mxu3 %v336_v5  ;;  %v1089_v11 = vld [vmem:[#allocation5 + $0xe0] sm:$0xff]  ;;  %v1092_v14 = vld [vmem:[#allocation5 + $0xd8] sm:$0xff]  ;;  %v490_v16 = vld [vmem:[#allocation5 + $0x150] sm:$0xff]  ;;  %s885_s7 = scalar_lea.hbm %s884_s30, 64 }
  0x34   : > { %498 = vmatpush.msra.mxu2 %v493_v6  ;;  %341 = vmatpush.msra.mxu0 %v336_v5  ;;  %v1095_v17 = vld [vmem:[#allocation5 + $0xd0] sm:$0xff]  ;;  %v332_v18 = vld [vmem:[#allocation5 + $0x48] sm:$0xff]  ;;  %v331_v21 = vld [vmem:[#allocation5 + $0x40] sm:$0xff]  ;;  %vm397_vm1 = vcmp.ge.s32.totalorder %v231_v0, 1  ;;  %p886_p1 = scmp.ne.s32.totalorder %s884_s30, %s885_s7  ;;  %p891_p9 = scmp.lt.s32.totalorder %s889_s10, %s885_s7 }
  0x35   : > { %432 = vmatpush.msra.mxu1 %v1086_v8  ;;  %718 = vmatpush.msra.mxu3 %v335_v9  ;;  %v489_v19 = vld [vmem:[#allocation5 + $0x148] sm:$0xff]  ;;  %v488_v22 = vld [vmem:[#allocation5 + $0x140] sm:$0xff]  ;;  %v330_v24 = vld [vmem:[#allocation5 + $0x38] sm:$0xff] }
  0x36   : > { %499 = vmatpush.msra.mxu2 %v492_v10  ;;  %342 = vmatpush.msra.mxu0 %v335_v9  ;;  %v1098_v20 = vld [vmem:[#allocation5 + $0xc8] sm:$0xff]  ;;  %v1101_v23 = vld [vmem:[#allocation5 + $0xc0] sm:$0xff]  ;;  %v487_v25 = vld [vmem:[#allocation5 + $0x138] sm:$0xff]  ;;  %p887_p4 = pnand %p886_p1, %p1035_p3  ;;  %p892_p2 = por %p891_p9, %p890_p11 }
  0x37   : > { %433 = vmatpush.msra.mxu1 %v1089_v11  ;;  %719 = vmatpush.msra.mxu3 %v334_v12  ;;  %v1104_v26 = vld [vmem:[#allocation5 + $0xb8] sm:$0xff]  ;;  %v329_v27 = vld [vmem:[#allocation5 + $0x30] sm:$0xff]  ;;  %v328_v30 = vld [vmem:[#allocation5 + $0x28] sm:$0xff] }
  0x38   : > { %500 = vmatpush.msra.mxu2 %v491_v13  ;;  %343 = vmatpush.msra.mxu0 %v334_v12  ;;  %v486_v28 = vld [vmem:[#allocation5 + $0x130] sm:$0xff]  ;;  %v485_v31 = vld [vmem:[#allocation5 + $0x128] sm:$0xff]  ;;  %v327_v33 = vld [vmem:[#allocation5 + $0x20] sm:$0xff]  ;;  %p888_p8 = pneg %p887_p4 }
  0x39   : > { %434 = vmatpush.msra.mxu1 %v1092_v14  ;;  %720 = vmatpush.msra.mxu3 %v333_v15  ;;  %v1107_v29 = vld [vmem:[#allocation5 + $0xb0] sm:$0xff]  ;;  %v1110_v32 = vld [vmem:[#allocation5 + $0xa8] sm:$0xff]  ;;  %v484_v34 = vld [vmem:[#allocation5 + $0x120] sm:$0xff] }
  0x3a   : > { %501 = vmatpush.msra.mxu2 %v490_v16  ;;  %344 = vmatpush.msra.mxu0 %v333_v15  ;;  %v1113_v35 = vld [vmem:[#allocation5 + $0xa0] sm:$0xff]  ;;  %v326_v36 = vld [vmem:[#allocation5 + $0x18] sm:$0xff]  ;;  %v325_v39 = vld [vmem:[#allocation5 + $0x10] sm:$0xff]  ;;  %p893_p10 = pnand %p892_p2, %p888_p8 }
  0x3b   : > { %435 = vmatpush.msra.mxu1 %v1095_v17  ;;  %721 = vmatpush.msra.mxu3 %v332_v18  ;;  %v483_v37 = vld [vmem:[#allocation5 + $0x118] sm:$0xff]  ;;  %v482_v40 = vld [vmem:[#allocation5 + $0x110] sm:$0xff]  ;;  %v324_v42 = vld [vmem:[#allocation5 + $0x8] sm:$0xff] }
  0x3c   : > { %502 = vmatpush.msra.mxu2 %v489_v19  ;;  %345 = vmatpush.msra.mxu0 %v332_v18  ;;  %v417_v38 = vld [vmem:[#allocation5 + $0x98] sm:$0xff]  ;;  %v416_v41 = vld [vmem:[#allocation5 + $0x90] sm:$0xff]  ;;  %v481_v43 = vld [vmem:[#allocation5 + $0x108] sm:$0xff] }
  0x3d   : > { %436 = vmatpush.msra.mxu1 %v1098_v20  ;;  %722 = vmatpush.msra.mxu3 %v331_v21  ;;  %v415_v44 = vld [vmem:[#allocation5 + $0x88] sm:$0xff]  ;;  %v323_v45 = vld [vmem:[#allocation5] sm:$0xff]  ;;  %v216_v47 = vld [vmem:[%s1071_s25 + $0x30] sm:$0xff] }
  0x3e   : > { %503 = vmatpush.msra.mxu2 %v488_v22  ;;  %346 = vmatpush.msra.mxu0 %v331_v21  ;;  %v480_v46 = vld [vmem:[#allocation5 + $0x100] sm:$0xff]  ;;  %v217_v50 = vld [vmem:[%s1071_s25 + $0x38] sm:$0xff]  ;;  %v211_v51 = vld [vmem:[%s1071_s25 + $0x8] sm:$0xff] }
  0x3f   : > { %437 = vmatpush.msra.mxu1 %v1101_v23  ;;  %723 = vmatpush.msra.mxu3 %v330_v24  ;;  %v210_v48 = vld [vmem:[%s1071_s25] sm:$0xff]  ;;  %v212_v52 = vld [vmem:[%s1071_s25 + $0x10] sm:$0xff]  ;;  %v213_v53 = vld [vmem:[%s1071_s25 + $0x18] sm:$0xff] }
  0x40   : > { %504 = vmatpush.msra.mxu2 %v487_v25  ;;  %347 = vmatpush.msra.mxu0 %v330_v24  ;;  %v414_v49 = vld [vmem:[#allocation5 + $0x80] sm:$0xff]  ;;  %v215_v55 = vld [vmem:[%s1071_s25 + $0x28] sm:$0xff] }
  0x41   : > { %438 = vmatpush.msra.mxu1 %v1104_v26  ;;  %724 = vmatpush.msra.mxu3 %v329_v27  ;;  %v214_v54 = vld [vmem:[%s1071_s25 + $0x20] sm:$0xff] }
  0x42   : > { %505 = vmatpush.msra.mxu2 %v486_v28  ;;  %348 = vmatpush.msra.mxu0 %v329_v27  ;;  %v1157_v12 = vld [vmem:[%s1255_s2] ss:$0 sm:$0xff] }
  0x43   : > { %439 = vmatpush.msra.mxu1 %v1107_v29  ;;  %725 = vmatpush.msra.mxu3 %v328_v30 }
  0x44   : > { %506 = vmatpush.msra.mxu2 %v485_v31  ;;  %349 = vmatpush.msra.mxu0 %v328_v30  ;;  %v222_v31 = vadd.s32 24, %v1141_v61 }
  0x45   : > { %440 = vmatpush.msra.mxu1 %v1110_v32  ;;  %726 = vmatpush.msra.mxu3 %v327_v33 }
  0x46   : > { %507 = vmatpush.msra.mxu2 %v484_v34  ;;  %350 = vmatpush.msra.mxu0 %v327_v33  ;;  %v223_v33 = vadd.s32 32, %v1141_v61 }
  0x47   : > { %441 = vmatpush.msra.mxu1 %v1113_v35  ;;  %727 = vmatpush.msra.mxu3 %v326_v36 }
  0x48   : > { %508 = vmatpush.msra.mxu2 %v483_v37  ;;  %351 = vmatpush.msra.mxu0 %v326_v36  ;;  %v252_v36 = vand.u32 31, %v222_v31 }
  0x49   : > { %442 = vmatpush.msra.mxu1 %v417_v38  ;;  %728 = vmatpush.msra.mxu3 %v325_v39 }
  0x4a   : > { %509 = vmatpush.msra.mxu2 %v482_v40  ;;  %352 = vmatpush.msra.mxu0 %v325_v39  ;;  %v259_v40 = vand.u32 31, %v223_v33  ;;  %vm557_vm3 = vcmp.lt.s32.totalorder %v252_v36, 31 }
  0x4b   : > { %443 = vmatpush.msra.mxu1 %v416_v41  ;;  %729 = vmatpush.msra.mxu3 %v324_v42 }
  0x4c   : > { %510 = vmatpush.msra.mxu2 %v481_v43  ;;  %353 = vmatpush.msra.mxu0 %v324_v42  ;;  %vm401_vm4 = vcmp.ge.s32.totalorder %v259_v40, 1 }
  0x4d   : > { %444 = vmatpush.msra.mxu1 %v415_v44  ;;  %730 = vmatpush.msra.mxu3 %v323_v45 }
  0x4e   : > { %511 = vmatpush.msra.mxu2 %v480_v46  ;;  %373 = vmatmul.f32.vlgmr.msra.gmra.mxu3 %v216_v47 }
  0x4f   : > { %512 = vmatmul.f32.vlgmr.msra.gmra.mxu2 %v210_v48  ;;  %445 = vmatpush.msra.mxu1 %v414_v49 }
  0x50   : > { %354 = vmatpush.msra.mxu0 %v323_v45  ;;  %446 = vmatmul.f32.vlgmr.msra.gmra.mxu1 %v210_v48 }
  0x51   : > { %355 = vmatmul.f32.vlgmr.msra.gmra.mxu0 %v210_v48  ;;  %731 = vmatpush.msrb.mxu3 %v1081_v4 }
  0x53   : > { %732 = vmatpush.msrb.mxu3 %v1084_v7 }
  0x55   : > { %733 = vmatpush.msrb.mxu3 %v1086_v8 }
  0x56   : > { %376 = vmatmul.f32.gmra.mxu3 %v217_v50 }
  0x57   : > { %515 = vmatmul.f32.gmra.mxu2 %v211_v51  ;;  %734 = vmatpush.msrb.mxu3 %v1089_v11 }
  0x58   : > { %449 = vmatmul.f32.gmra.mxu1 %v211_v51 }
  0x59   : > { %358 = vmatmul.f32.gmra.mxu0 %v211_v51  ;;  %735 = vmatpush.msrb.mxu3 %v1092_v14 }
  0x5b   : > { %736 = vmatpush.msrb.mxu3 %v1095_v17 }
  0x5d   : > { %737 = vmatpush.msrb.mxu3 %v1098_v20 }
  0x5f   : > { %518 = vmatmul.f32.gmra.mxu2 %v212_v52  ;;  %738 = vmatpush.msrb.mxu3 %v1101_v23 }
  0x60   : > { %452 = vmatmul.f32.gmra.mxu1 %v212_v52 }
  0x61   : > { %361 = vmatmul.f32.gmra.mxu0 %v212_v52  ;;  %739 = vmatpush.msrb.mxu3 %v1104_v26 }
  0x63   : > { %740 = vmatpush.msrb.mxu3 %v1107_v29 }
  0x65   : > { %741 = vmatpush.msrb.mxu3 %v1110_v32 }
  0x67   : > { %521 = vmatmul.f32.gmra.mxu2 %v213_v53  ;;  %742 = vmatpush.msrb.mxu3 %v1113_v35 }
  0x68   : > { %455 = vmatmul.f32.gmra.mxu1 %v213_v53 }
  0x69   : > { %364 = vmatmul.f32.gmra.mxu0 %v213_v53  ;;  %743 = vmatpush.msrb.mxu3 %v417_v38 }
  0x6b   : > { %744 = vmatpush.msrb.mxu3 %v416_v41 }
  0x6d   : > { %745 = vmatpush.msrb.mxu3 %v415_v44 }
  0x6f   : > { %524 = vmatmul.f32.gmra.mxu2 %v214_v54  ;;  %746 = vmatpush.msrb.mxu3 %v414_v49 }
  0x70   : > { %458 = vmatmul.f32.gmra.mxu1 %v214_v54  ;;  %467 = vmatmul.f32.vlgmr.msrb.gmra.mxu3 %v217_v50 }
  0x71   : > { %367 = vmatmul.f32.gmra.mxu0 %v214_v54 }
  0x77   : > { %527 = vmatmul.f32.gmra.mxu2 %v215_v55 }
  0x78   : > { %461 = vmatmul.f32.gmra.mxu1 %v215_v55 }
  0x79   : > { %370 = vmatmul.f32.gmra.mxu0 %v215_v55 }
  0x7f   : > { %530 = vmatmul.f32.gmra.mxu2 %v216_v47 }
  0x80   : > { %464 = vmatmul.f32.gmra.mxu1 %v216_v47 }
  0x87   : > { %533 = vmatmul.f32.gmra.mxu2 %v217_v50 }
  0xcd   : > { %v447_v56 = vpop.f32.mrf.mxu1 }
  0xce   : > { %v356_v57 = vpop.f32.mrf.mxu0 }
  0xcf   : > { %v380_v1 = vrot.slane %v356_v57, 7 }
  0xd1   : > { %v1137_v59 = vpop.f32.mrf.mxu3 }
  0xd2   : > { %v1139_v60 = vpop.f32.mrf.mxu2 }
  0xd3   : > { %v537_v8 = vrot.slane %v1139_v60, 1 }
  0xd5   : > { %v450_v63 = vpop.f32.mrf.mxu1 }
  0xd6   : > { %v359_v62 = vpop.f32.mrf.mxu0 }
  0xd7   : > { %v381_v5 = vrot.slane %v359_v62, 7 }
  0xd9   : > { %v1144_v2 = vpop.f32.mrf.mxu3  ;;  %v395_v13 = vsel %vm388_vm0, %v380_v1, %v381_v5 }
  0xda   : > { %v516_v3 = vpop.f32.mrf.mxu2  ;;  %v387_v4 = vrot.slane %v1144_v2, 7  ;;  %v472_v17 = vadd.f32 %v450_v63, %v395_v13 }
  0xdb   : > { %v538_v6 = vrot.slane %v516_v3, 1 }
  0xdc   : > { %v396_v7 = vsel %vm388_vm0, %v387_v4, %v380_v1 }
  0xdd   : > { %v405_v9 = vsel %vm397_vm1, %v396_v7, 0.0  ;;  %v552_v14 = vsel %vm545_vm2, %v537_v8, %v538_v6  ;;  %v453_v16 = vpop.f32.mrf.mxu1  ;;  %v386_v7 = vrot.slane %v1137_v59, 7 }
  0xde   : > { %v362_v10 = vpop.f32.mrf.mxu0  ;;  %v471_v11 = vadd.f32 %v447_v56, %v405_v9 }
  0xdf   : > { %v382_v21 = vrot.slane %v362_v10, 7 }
  0xe0   : > { %v570_v15 = vadd.f32 %v552_v14, %v471_v11 }
  0xe1   : > { %v394_v25 = vsel %vm388_vm0, %v381_v5, %v382_v21 }
  0xe2   : > { %v519_v18 = vpop.f32.mrf.mxu2  ;;  %v582_v19 = vadd.f32 %v1157_v12, %v570_v15  ;;  %v473_v27 = vadd.f32 %v453_v16, %v394_v25  ;;  %v389_v16 = vsel %vm388_vm0, %v386_v7, %v387_v4 }
  0xe3   : > { %v539_v20 = vrot.slane %v519_v18, 1 }
  0xe4   : > { %590 = vst [vmem:[%s1168_s27] sm:$0xff] %v582_v19 }
  0xe5   : > { %v551_v22 = vsel %vm545_vm2, %v538_v6, %v539_v20  ;;  %v456_v29 = vpop.f32.mrf.mxu1  ;;  %v226_v6 = vadd.s32 56, %v1141_v61 }
  0xe6   : > { %v571_v23 = vadd.f32 %v551_v22, %v472_v17  ;;  %v365_v24 = vpop.f32.mrf.mxu0 }
  0xe7   : > { %v383_v32 = vrot.slane %v365_v24, 7  ;;  %v280_v11 = vand.u32 31, %v226_v6 }
  0xe8   : > { %v583_v26 = vadd.f32 %v1157_v12, %v571_v23 }
  0xe9   : > { %v393_v39 = vsel %vm388_vm0, %v382_v21, %v383_v32  ;;  %vm561_vm5 = vcmp.lt.s32.totalorder %v280_v11, 31 }
  0xea   : > { %591 = vst [vmem:[%s1168_s27 + $0x8] sm:$0xff] %v583_v26  ;;  %v522_v28 = vpop.f32.mrf.mxu2  ;;  %v474_v43 = vadd.f32 %v456_v29, %v393_v39 }
  0xeb   : > { %v540_v30 = vrot.slane %v522_v28, 1 }
  0xed   : > { %v550_v34 = vsel %vm545_vm2, %v539_v20, %v540_v30  ;;  %v459_v46 = vpop.f32.mrf.mxu1 }
  0xee   : > { %v572_v35 = vadd.f32 %v550_v34, %v473_v27  ;;  %v368_v37 = vpop.f32.mrf.mxu0 }
  0xef   : > { %v384_v41 = vrot.slane %v368_v37, 7 }
  0xf0   : > { %v584_v38 = vadd.f32 %v1157_v12, %v572_v35 }
  0xf1   : > { %v392_v45 = vsel %vm388_vm0, %v383_v32, %v384_v41 }
  0xf2   : > { %592 = vst [vmem:[%s1168_s27 + $0x10] sm:$0xff] %v584_v38  ;;  %v525_v42 = vpop.f32.mrf.mxu2  ;;  %v409_v50 = vsel %vm401_vm4, %v392_v45, 0.0 }
  0xf3   : > { %v541_v44 = vrot.slane %v525_v42, 1  ;;  %v475_v52 = vadd.f32 %v459_v46, %v409_v50  ;;  %v468_v17 = vpop.f32.mrf.mxu3 }
  0xf4   : > { %v478_v20 = vadd.f32 %v468_v17, %v389_v16 }
  0xf5   : > { %v549_v47 = vsel %vm545_vm2, %v540_v30, %v541_v44  ;;  %v462_v62 = vpop.f32.mrf.mxu1 }
  0xf6   : > { %v565_v48 = vsel %vm557_vm3, %v549_v47, 0.0  ;;  %v371_v54 = vpop.f32.mrf.mxu0 }
  0xf7   : > { %v573_v49 = vadd.f32 %v565_v48, %v474_v43  ;;  %v385_v57 = vrot.slane %v371_v54, 7 }
  0xf9   : > { %v585_v51 = vadd.f32 %v1157_v12, %v573_v49  ;;  %v391_v63 = vsel %vm388_vm0, %v384_v41, %v385_v57  ;;  %v390_v14 = vsel %vm388_vm0, %v385_v57, %v386_v7 }
  0xfa   : > { %v528_v53 = vpop.f32.mrf.mxu2  ;;  %v476_v1 = vadd.f32 %v462_v62, %v391_v63 }
  0xfb   : > { %593 = vst [vmem:[%s1168_s27 + $0x18] sm:$0xff] %v585_v51  ;;  %v542_v55 = vrot.slane %v528_v53, 1 }
  0xfd   : > { %v548_v56 = vsel %vm545_vm2, %v541_v44, %v542_v55  ;;  %v465_v15 = vpop.f32.mrf.mxu1 }
  0xfe   : > { %v574_v58 = vadd.f32 %v548_v56, %v475_v52  ;;  %v477_v19 = vadd.f32 %v465_v15, %v390_v14 }
 0x100   : > { %v586_v0 = vadd.f32 %v1157_v12, %v574_v58 }
 0x102   : > { %594 = vst [vmem:[%s1168_s27 + $0x20] sm:$0xff] %v586_v0  ;;  %v531_v3 = vpop.f32.mrf.mxu2 }
 0x103   : > { %v543_v5 = vrot.slane %v531_v3, 1 }
 0x105   : > { %v547_v9 = vsel %vm545_vm2, %v542_v55, %v543_v5 }
 0x106   : > { %v575_v10 = vadd.f32 %v547_v9, %v476_v1 }
 0x108   : > { %v587_v13 = vadd.f32 %v1157_v12, %v575_v10 }
 0x10a   : > { %595 = vst [vmem:[%s1168_s27 + $0x28] sm:$0xff] %v587_v13  ;;  %v534_v59 = vpop.f32.mrf.mxu2 }
 0x10b   : > { %v544_v18 = vrot.slane %v534_v59, 1 }
 0x10d   : > { %v546_v2 = vsel %vm545_vm2, %v543_v5, %v544_v18  ;;  %v553_v4 = vsel %vm545_vm2, %v544_v18, %v537_v8 }
 0x10e   : > { %v569_v21 = vsel %vm561_vm5, %v553_v4, 0.0  ;;  %v576_v22 = vadd.f32 %v546_v2, %v477_v19 }
 0x10f   : > { %v577_v23 = vadd.f32 %v569_v21, %v478_v20 }
 0x110   : > { %v588_v24 = vadd.f32 %v1157_v12, %v576_v22 }
 0x111   : > { %v589_v25 = vadd.f32 %v1157_v12, %v577_v23 }
 0x112   : > { %596 = vst [vmem:[%s1168_s27 + $0x30] sm:$0xff] %v588_v24 }
 0x113   : > { %597 = vst [vmem:[%s1168_s27 + $0x38] sm:$0xff] %v589_v25 }
 0x114   : > { %896 = shalt.err (!%p893_p10)
}
 0x115   : > { %s944_s6 = smov 128   ;;  %s945_s25 = smov 8  }
 0x116   : > { %753 = dma.vmem_to_hbm [thread:$0]  (%p1035_p3), %s612_s16, 1024, %s614_s24, %s599_s29, %s944_s6, %s944_s6, %s945_s25  }
 0x117 PF: > { %s628_s18 = sand.u32 1, %s927_s12   ;;  %p1262_p12 = scmp.ge.s32.totalorder %s939_s15, 2 }
 0x118   : > { %s629_s23 = scalar_lea.sflag [#allocation4], %s628_s18 }
 0x119   : > { %p764_p13 = pnand %p1262_p12, %p1001_p6 }
 0x11b   : > { %p765_p0 = pneg %p764_p13 }
 0x11d   : > { %922 = dma.done.wait (%p765_p0), %s629_s23, 1024  }
 0x11e   : > { %924 = vsyncadd (%p765_p0), %s629_s23, 4294966272  ;;  %p17_p5 = scmp.ge.s32.totalorder %s1019_s26, 4   ;;  %s1263_s12 = smov %s931_s13 }
 0x11f   : > { %s1264_s13 = smov %s935_s14  ;;  %s1265_s14 = smov %s1031_s4 }
 0x120   : > { %s1266_s15 = smov %s1019_s26  ;;  %19 = sbr.rel (!%p17_p5) target bundleno = 6 (0x6), region = 83 }
 0x125   :  { %635 = vsyncpa [#allocation3], 1 }
 0x126   :  { %637 = vsyncpa [#allocation3 + $0x1], 1 }
 0x127   :  { %638 = vsyncpa [#allocation6], 1 }
 0x128   :  { %639 = vsyncpa [#allocation4], 1 }
 0x129   :  { %641 = vsyncpa [#allocation4 + $0x1], 1 }

</bundles_post_ra>
